<compile_context>
chip_gen: v5e
topology: v5e:2x2
jax: 0.10.0
libtpu: 0.0.40
codegen_flags: <defaults>
</compile_context>

<pallas_src>
import functools

import jax
import jax.numpy as jnp
from jax import lax
from jax.experimental import pallas as pl
from jax.experimental.pallas import tpu as pltpu


def _round_up(n, m):
    return ((n + m - 1) // m) * m


def _pad_cols(w, n):
    pad = n - w.shape[-1]
    if pad == 0:
        return w
    return jnp.pad(w, ((0, 0), (0, pad)))


def _vmem_budget_bytes():
    """Per-core VMEM budget, generation-aware with a conservative fallback."""
    phys = 64 * 1024 * 1024  # conservative default (v7x per-core physical VMEM)
    try:
        info = pltpu.get_tpu_info()
        phys = int(getattr(info, "vmem_capacity_bytes", phys))
    except Exception:
        pass
    # Leave headroom for compiler scratch; cap so v6e/v5e (128 MiB) stay sane.
    return min(int(phys * 0.7), 96 * 1024 * 1024)


def _pick_key_tile(Sk, Sq, D, d_kp, d_vp, itemsize, vmem_budget):
    """Largest 128-aligned key tile whose per-step footprint fits the budget."""
    candidates = [t for t in (512, 256, 128) if Sk % t == 0]
    if not candidates:
        return Sk  # toy / non-128-divisible sequences: single key block
    resident = (Sq * D * itemsize                    # x_q block (grid-invariant)
                + (2 * d_kp + d_vp) * D * itemsize   # weights
                + Sq * d_kp * itemsize               # hoisted Q scratch
                + Sq * d_vp * 4                      # fp32 accumulator
                + 2 * Sq * d_vp * itemsize)          # o output block
    for t in candidates:
        per_tile = (4 * t * D * itemsize             # k, v input tiles (double-buffered)
                    + 2 * Sq * t * itemsize          # attn output tile (double-buffered)
                    + 3 * Sq * t * 4)                # fp32 scores / exp temporaries
        if resident + per_tile <= vmem_budget:
            return t
    return candidates[-1]


def _dpa_kernel(xq_ref, xk_ref, xv_ref, wq_ref, wk_ref, wv_ref, *rest,
                d_k, mask, tile_sk, return_attn):
    if return_attn:
        o_ref, attn_ref, q_ref, acc_ref = rest
    else:
        o_ref, q_ref, acc_ref = rest
        attn_ref = None

    sk_idx = pl.program_id(1)
    cd = xq_ref.dtype
    # fp32 inputs: full-f32 matmul precision (matches the fp32 reference).
    # bf16 inputs: bf16 MXU operands with fp32 accumulation.
    prec = lax.Precision.HIGHEST if cd == jnp.float32 else None

    # ---- Per-batch init (hoisted out of the key-tile loop): project Q once,
    # fold 1/sqrt(d_k) into it, keep it in the MXU operand dtype in VMEM, and
    # zero the fp32 output accumulator.
    @pl.when(sk_idx == 0)
    def _():
        q = jnp.dot(xq_ref[0], wq_ref[...],
                    preferred_element_type=jnp.float32, precision=prec)
        q_ref[...] = (q * (1.0 / (d_k ** 0.5))).astype(q_ref.dtype)
        acc_ref[...] = jnp.zeros_like(acc_ref)

    # ---- Per-key-tile K / V projections (fp32 accumulate).
    k = jnp.dot(xk_ref[0], wk_ref[...],
                preferred_element_type=jnp.float32, precision=prec)
    v = jnp.dot(xv_ref[0], wv_ref[...],
                preferred_element_type=jnp.float32, precision=prec)

    # scores = Q @ K^T without materializing a transpose: contract the last
    # dims of q and k so the transposed operand folds into the MXU op.
    scores = lax.dot_general(q_ref[...], k.astype(cd),
                             (((1,), (1,)), ((), ())),
                             preferred_element_type=jnp.float32,
                             precision=prec)                       # (Sq, Tk) fp32

    if mask:
        # Causal (tril) mask with a large finite negative.  For Sq >= Sk this is
        # numerically identical to the -inf reference; for Sq < Sk a fully
        # masked column yields a uniform column instead of the reference's NaNs.
        row = lax.broadcasted_iota(jnp.int32, scores.shape, 0)
        col = lax.broadcasted_iota(jnp.int32, scores.shape, 1) + sk_idx * tile_sk
        scores = jnp.where(col <= row, scores, -1e30)
        # TODO(synk): gate fully-masked query row blocks with pl.when to skip
        # ~half the MXU / exp work for long causal sequences.

    # Softmax over the QUERY axis (dim=-2 in the module).  Each key column
    # normalizes independently, so key tiling needs no online-softmax carry.
    m = jnp.max(scores, axis=0, keepdims=True)
    e = jnp.exp(scores - m)
    denom = jnp.sum(e, axis=0, keepdims=True)
    # Exact reciprocal: the attention matrix is a *returned* output, so do not
    # leak an approximate EUP reciprocal into the results.
    attn = (e * pl.reciprocal(denom, approx=False)).astype(cd)     # single cast

    if return_attn:
        attn_ref[0] = attn.astype(attn_ref.dtype)

    # Weighted values: accumulate key-tile partial sums in fp32 VMEM.
    acc_ref[...] += jnp.dot(attn, v.astype(cd),
                            preferred_element_type=jnp.float32, precision=prec)

    @pl.when(sk_idx == pl.num_programs(1) - 1)
    def _():
        o_ref[0] = acc_ref[...].astype(o_ref.dtype)


def dot_product_attention(x_q, x_k, x_v, w_q, w_k, w_v, *, mask=False,
                          return_attn=True):
    """Pallas DotProductAttention forward.

    x_q: (B, Sq, D); x_k, x_v: (B, Sk, D) (pass None to reuse x_q)
    w_q, w_k: (D, d_k); w_v: (D, d_v)
    returns: (weighted values (B, Sq, d_v), attention (B, Sq, Sk))
             or just the weighted values if return_attn=False.
    """
    if x_k is None:
        x_k = x_q
    if x_v is None:
        x_v = x_q

    B, Sq, D = x_q.shape
    _, Sk, _ = x_k.shape
    d_k = w_q.shape[-1]
    d_v = w_v.shape[-1]
    out_dtype = x_q.dtype
    itemsize = jnp.dtype(out_dtype).itemsize

    # Lane-dense projections: zero-pad d_k / d_v to multiples of 128.  Zero
    # Q/K columns do not change the scores; zero V columns are sliced off.
    d_kp = _round_up(d_k, 128)
    d_vp = _round_up(d_v, 128)
    w_q_p = _pad_cols(w_q, d_kp)
    w_k_p = _pad_cols(w_k, d_kp)
    w_v_p = _pad_cols(w_v, d_vp)

    vmem_budget = _vmem_budget_bytes()
    tile_sk = _pick_key_tile(Sk, Sq, D, d_kp, d_vp, itemsize, vmem_budget)
    n_sk = Sk // tile_sk

    in_specs = [
        pl.BlockSpec((1, Sq, D), lambda b, s: (b, 0, 0)),
        pl.BlockSpec((1, tile_sk, D), lambda b, s: (b, s, 0)),
        pl.BlockSpec((1, tile_sk, D), lambda b, s: (b, s, 0)),
        pl.BlockSpec((D, d_kp), lambda b, s: (0, 0)),
        pl.BlockSpec((D, d_kp), lambda b, s: (0, 0)),
        pl.BlockSpec((D, d_vp), lambda b, s: (0, 0)),
    ]
    out_shapes = [jax.ShapeDtypeStruct((B, Sq, d_vp), out_dtype)]
    out_specs = [pl.BlockSpec((1, Sq, d_vp), lambda b, s: (b, 0, 0))]   # resident accumulator target
    if return_attn:
        out_shapes.append(jax.ShapeDtypeStruct((B, Sq, Sk), out_dtype))
        out_specs.append(pl.BlockSpec((1, Sq, tile_sk), lambda b, s: (b, 0, s)))

    kernel = functools.partial(_dpa_kernel, d_k=d_k, mask=mask,
                               tile_sk=tile_sk, return_attn=return_attn)

    results = pl.pallas_call(
        kernel,
        out_shape=out_shapes,
        grid_spec=pltpu.PrefetchScalarGridSpec(
            num_scalar_prefetch=0,
            grid=(B, n_sk),
            in_specs=in_specs,
            out_specs=out_specs,
            scratch_shapes=[
                pltpu.VMEM((Sq, d_kp), out_dtype),    # hoisted, pre-scaled Q
                pltpu.VMEM((Sq, d_vp), jnp.float32),  # fp32 output accumulator
            ],
        ),
        compiler_params=pltpu.CompilerParams(
            dimension_semantics=("parallel", "arbitrary"),
            vmem_limit_bytes=vmem_budget,
        ),
    )(x_q, x_k, x_v, w_q_p, w_k_p, w_v_p)

    out = results[0]
    if d_vp != d_v:
        out = out[..., :d_v]
    if return_attn:
        return out, results[1]
    return out


def _reference(x_q, x_k, x_v, w_q, w_k, w_v, *, mask=False):
    """Pure-JAX reference matching the PyTorch module exactly (fp32 math)."""
    if x_k is None:
        x_k = x_q
    if x_v is None:
        x_v = x_q
    d_k = w_q.shape[-1]
    prec = lax.Precision.HIGHEST if x_q.dtype == jnp.float32 else None
    Q = jnp.matmul(x_q, w_q, precision=prec)
    K = jnp.matmul(x_k, w_k, precision=prec)
    V = jnp.matmul(x_v, w_v, precision=prec)
    scores = jnp.matmul(Q, jnp.swapaxes(K, -2, -1), precision=prec) / (d_k ** 0.5)
    if mask:
        sq, sk = scores.shape[-2:]
        tril = jnp.tril(jnp.ones((sq, sk), scores.dtype))
        scores = jnp.where(tril == 0, -jnp.inf, scores)
    attn = jax.nn.softmax(scores, axis=-2)
    return jnp.matmul(attn, V, precision=prec), attn


if __name__ == "__main__":
    # Small shapes consistent with the module: batch=2, seq=8, d_model=32, d_k=d_v=16.
    B, S, D, d_k, d_v = 2, 8, 32, 16, 16

    key = jax.random.PRNGKey(0)
    kq, kk, kv, kwq, kwk, kwv = jax.random.split(key, 6)

    # Moderate input scale keeps the query-axis softmax away from one-hot
    # saturation so fp32-vs-fp32 comparisons are well conditioned.
    x_q = jax.random.normal(kq, (B, S, D), dtype=jnp.float32) * 0.25
    x_k = jax.random.normal(kk, (B, S, D), dtype=jnp.float32) * 0.25
    x_v = jax.random.normal(kv, (B, S, D), dtype=jnp.float32) * 0.25

    # Deterministic parameter init (stands in for torch.randn in __init__).
    w_q = jax.random.normal(kwq, (D, d_k), dtype=jnp.float32)
    w_k = jax.random.normal(kwk, (D, d_k), dtype=jnp.float32)
    w_v = jax.random.normal(kwv, (D, d_v), dtype=jnp.float32)

    # Case 1: cross-attention, no mask.
    out, attn = dot_product_attention(x_q, x_k, x_v, w_q, w_k, w_v, mask=False)
    out = jax.block_until_ready(out)
    ref_out, ref_attn = _reference(x_q, x_k, x_v, w_q, w_k, w_v, mask=False)
    assert out.shape == (B, S, d_v) and attn.shape == (B, S, S)
    assert jnp.allclose(out, ref_out, rtol=2e-2, atol=2e-2), "values mismatch (no mask)"
    assert jnp.allclose(attn, ref_attn, rtol=2e-2, atol=2e-2), "attention mismatch (no mask)"

    # Case 2: self-attention (x_k = x_v = None), causal mask.
    out_m, attn_m = dot_product_attention(x_q, None, None, w_q, w_k, w_v, mask=True)
    out_m = jax.block_until_ready(out_m)
    ref_out_m, ref_attn_m = _reference(x_q, None, None, w_q, w_k, w_v, mask=True)
    assert jnp.allclose(out_m, ref_out_m, rtol=2e-2, atol=2e-2), "values mismatch (mask)"
    assert jnp.allclose(attn_m, ref_attn_m, rtol=2e-2, atol=2e-2), "attention mismatch (mask)"

    # Case 3: values-only fast path (skips the (B, Sq, Sk) attention writeback).
    out_nf = dot_product_attention(x_q, x_k, x_v, w_q, w_k, w_v,
                                   mask=False, return_attn=False)
    out_nf = jax.block_until_ready(out_nf)
    assert out_nf.shape == (B, S, d_v)
    assert jnp.allclose(out_nf, ref_out, rtol=2e-2, atol=2e-2), "values mismatch (no-attn path)"

    # Case 4: bf16 inputs exercise the bf16-MXU-operand / fp32-accumulate path.
    out_bf, attn_bf = dot_product_attention(
        x_q.astype(jnp.bfloat16), x_k.astype(jnp.bfloat16), x_v.astype(jnp.bfloat16),
        w_q.astype(jnp.bfloat16), w_k.astype(jnp.bfloat16), w_v.astype(jnp.bfloat16),
        mask=False)
    out_bf = jax.block_until_ready(out_bf)
    assert bool(jnp.isfinite(out_bf.astype(jnp.float32)).all())
    assert bool(jnp.isfinite(attn_bf.astype(jnp.float32)).all())

    print("KERNEL_OK")
</pallas_src>

<mosaic_0001>
module attributes {stable_mosaic.version = 11 : i64} {
  func.func @_dpa_kernel(%arg0: i32, %arg1: i32, %arg2: memref<1x8x32xf32, #tpu.memory_space<vmem>>, %arg3: memref<1x8x32xf32, #tpu.memory_space<vmem>>, %arg4: memref<1x8x32xf32, #tpu.memory_space<vmem>>, %arg5: memref<32x128xf32, #tpu.memory_space<vmem>>, %arg6: memref<32x128xf32, #tpu.memory_space<vmem>>, %arg7: memref<32x128xf32, #tpu.memory_space<vmem>>, %arg8: memref<1x8x128xf32, #tpu.memory_space<vmem>>, %arg9: memref<1x8x8xf32, #tpu.memory_space<vmem>>, %arg10: memref<8x128xf32, #tpu.memory_space<vmem>>, %arg11: memref<8x128xf32, #tpu.memory_space<vmem>>) attributes {dimension_semantics = [#tpu.dimension_semantics<parallel>, #tpu.dimension_semantics<arbitrary>], iteration_bounds = array<i64: 2, 1>, scalar_prefetch = 0 : i64, scratch_operands = 2 : i64, tpu.core_type = #tpu.core_type<tc>, window_params = [{transform_indices = @transform_0, window_bounds = array<i64: 1, 8, 32>}, {transform_indices = @transform_1, window_bounds = array<i64: 1, 8, 32>}, {transform_indices = @transform_2, window_bounds = array<i64: 1, 8, 32>}, {pipeline_mode = #tpu.pipeline_mode<synchronous>, transform_indices = @transform_3, window_bounds = array<i64: 32, 128>}, {pipeline_mode = #tpu.pipeline_mode<synchronous>, transform_indices = @transform_4, window_bounds = array<i64: 32, 128>}, {pipeline_mode = #tpu.pipeline_mode<synchronous>, transform_indices = @transform_5, window_bounds = array<i64: 32, 128>}, {transform_indices = @transform_6, window_bounds = array<i64: 1, 8, 128>}, {transform_indices = @transform_7, window_bounds = array<i64: 1, 8, 8>}]} {
    %c0_i32 = arith.constant 0 : i32
    %0 = arith.cmpi eq, %arg1, %c0_i32 : i32
    %1 = arith.extui %0 : i1 to i32
    %c0_i32_0 = arith.constant 0 : i32
    %2 = arith.cmpi ne, %1, %c0_i32_0 : i32
    scf.if %2 {
      %c0_26 = arith.constant 0 : index
      %c0_27 = arith.constant 0 : index
      %c0_28 = arith.constant 0 : index
      %33 = vector.load %arg2[%c0_26, %c0_27, %c0_28] : memref<1x8x32xf32, #tpu.memory_space<vmem>>, vector<1x8x32xf32>
      %34 = vector.shape_cast %33 : vector<1x8x32xf32> to vector<8x32xf32>
      %c0_29 = arith.constant 0 : index
      %c0_30 = arith.constant 0 : index
      %35 = vector.load %arg5[%c0_29, %c0_30] : memref<32x128xf32, #tpu.memory_space<vmem>>, vector<32x128xf32>
      %cst_31 = arith.constant dense<0.000000e+00> : vector<8x128xf32>
      %36 = tpu.matmul %34, %35, %cst_31 {dimension_numbers = #tpu.dot_dimension_numbers<[1], [0], [0], [1], [0, 0, 1, 1], [], []>, precision = #tpu.contract_precision<fp32>} : vector<8x32xf32>, vector<32x128xf32>, vector<8x128xf32> -> vector<8x128xf32>
      %cst_32 = arith.constant 2.500000e-01 : f32
      %37 = vector.broadcast %cst_32 : f32 to vector<8x128xf32>
      %38 = arith.mulf %36, %37 : vector<8x128xf32>
      %c0_33 = arith.constant 0 : index
      %c0_34 = arith.constant 0 : index
      %39 = vector.load %arg10[%c0_33, %c0_34] : memref<8x128xf32, #tpu.memory_space<vmem>>, vector<8x128xf32>
      tpu.vector_store %arg10[%c0_33, %c0_34], %38 {strides = array<i32>} : memref<8x128xf32, #tpu.memory_space<vmem>>, vector<8x128xf32>,
      %cst_35 = arith.constant 0.000000e+00 : f32
      %40 = vector.broadcast %cst_35 : f32 to vector<8x128xf32>
      %c0_36 = arith.constant 0 : index
      %c0_37 = arith.constant 0 : index
      %41 = vector.load %arg11[%c0_36, %c0_37] : memref<8x128xf32, #tpu.memory_space<vmem>>, vector<8x128xf32>
      tpu.vector_store %arg11[%c0_36, %c0_37], %40 {strides = array<i32>} : memref<8x128xf32, #tpu.memory_space<vmem>>, vector<8x128xf32>,
    } else {
    }
    %c0 = arith.constant 0 : index
    %c0_1 = arith.constant 0 : index
    %c0_2 = arith.constant 0 : index
    %3 = vector.load %arg3[%c0, %c0_1, %c0_2] : memref<1x8x32xf32, #tpu.memory_space<vmem>>, vector<1x8x32xf32>
    %4 = vector.shape_cast %3 : vector<1x8x32xf32> to vector<8x32xf32>
    %c0_3 = arith.constant 0 : index
    %c0_4 = arith.constant 0 : index
    %5 = vector.load %arg6[%c0_3, %c0_4] : memref<32x128xf32, #tpu.memory_space<vmem>>, vector<32x128xf32>
    %cst = arith.constant dense<0.000000e+00> : vector<8x128xf32>
    %6 = tpu.matmul %4, %5, %cst {dimension_numbers = #tpu.dot_dimension_numbers<[1], [0], [0], [1], [0, 0, 1, 1], [], []>, precision = #tpu.contract_precision<fp32>} : vector<8x32xf32>, vector<32x128xf32>, vector<8x128xf32> -> vector<8x128xf32>
    %c0_5 = arith.constant 0 : index
    %c0_6 = arith.constant 0 : index
    %c0_7 = arith.constant 0 : index
    %7 = vector.load %arg4[%c0_5, %c0_6, %c0_7] : memref<1x8x32xf32, #tpu.memory_space<vmem>>, vector<1x8x32xf32>
    %8 = vector.shape_cast %7 : vector<1x8x32xf32> to vector<8x32xf32>
    %c0_8 = arith.constant 0 : index
    %c0_9 = arith.constant 0 : index
    %9 = vector.load %arg7[%c0_8, %c0_9] : memref<32x128xf32, #tpu.memory_space<vmem>>, vector<32x128xf32>
    %cst_10 = arith.constant dense<0.000000e+00> : vector<8x128xf32>
    %10 = tpu.matmul %8, %9, %cst_10 {dimension_numbers = #tpu.dot_dimension_numbers<[1], [0], [0], [1], [0, 0, 1, 1], [], []>, precision = #tpu.contract_precision<fp32>} : vector<8x32xf32>, vector<32x128xf32>, vector<8x128xf32> -> vector<8x128xf32>
    %c0_11 = arith.constant 0 : index
    %c0_12 = arith.constant 0 : index
    %11 = vector.load %arg10[%c0_11, %c0_12] : memref<8x128xf32, #tpu.memory_space<vmem>>, vector<8x128xf32>
    %cst_13 = arith.constant dense<0.000000e+00> : vector<8x8xf32>
    %12 = tpu.matmul %11, %6, %cst_13 {dimension_numbers = #tpu.dot_dimension_numbers<[1], [1], [0], [0], [0, 0, 1, 0], [], []>, precision = #tpu.contract_precision<fp32>} : vector<8x128xf32>, vector<8x128xf32>, vector<8x8xf32> -> vector<8x8xf32>
    %cst_14 = arith.constant dense<0xFF800000> : vector<8xf32>
    %13 = vector.multi_reduction <maximumf>, %12, %cst_14 [0] : vector<8x8xf32> to vector<8xf32>
    %14 = vector.shape_cast %13 : vector<8xf32> to vector<1x8xf32>
    %15 = vector.broadcast %14 : vector<1x8xf32> to vector<8x8xf32>
    %16 = arith.subf %12, %15 : vector<8x8xf32>
    %17 = math.exp %16 : vector<8x8xf32>
    %cst_15 = arith.constant dense<0.000000e+00> : vector<8xf32>
    %18 = vector.multi_reduction <add>, %17, %cst_15 [0] : vector<8x8xf32> to vector<8xf32>
    %19 = vector.shape_cast %18 : vector<8xf32> to vector<1x8xf32>
    %20 = tpu.reciprocal %19 : vector<1x8xf32> -> vector<1x8xf32>
    %21 = vector.broadcast %20 : vector<1x8xf32> to vector<8x8xf32>
    %22 = arith.mulf %17, %21 : vector<8x8xf32>
    %c0_16 = arith.constant 0 : index
    %c0_17 = arith.constant 0 : index
    %c0_18 = arith.constant 0 : index
    %23 = vector.load %arg9[%c0_16, %c0_17, %c0_18] : memref<1x8x8xf32, #tpu.memory_space<vmem>>, vector<1x8x8xf32>
    %24 = vector.shape_cast %23 : vector<1x8x8xf32> to vector<8x8xf32>
    %25 = vector.shape_cast %22 : vector<8x8xf32> to vector<1x8x8xf32>
    tpu.vector_store %arg9[%c0_16, %c0_17, %c0_18], %25 {strides = array<i32>} : memref<1x8x8xf32, #tpu.memory_space<vmem>>, vector<1x8x8xf32>,
    %c0_19 = arith.constant 0 : index
    %c0_20 = arith.constant 0 : index
    %26 = vector.load %arg11[%c0_19, %c0_20] : memref<8x128xf32, #tpu.memory_space<vmem>>, vector<8x128xf32>
    %cst_21 = arith.constant dense<0.000000e+00> : vector<8x128xf32>
    %27 = tpu.matmul %22, %10, %cst_21 {dimension_numbers = #tpu.dot_dimension_numbers<[1], [0], [0], [1], [0, 0, 1, 1], [], []>, precision = #tpu.contract_precision<fp32>} : vector<8x8xf32>, vector<8x128xf32>, vector<8x128xf32> -> vector<8x128xf32>
    %28 = arith.addf %26, %27 : vector<8x128xf32>
    %c0_22 = arith.constant 0 : index
    %c0_23 = arith.constant 0 : index
    %29 = vector.load %arg11[%c0_22, %c0_23] : memref<8x128xf32, #tpu.memory_space<vmem>>, vector<8x128xf32>
    tpu.vector_store %arg11[%c0_22, %c0_23], %28 {strides = array<i32>} : memref<8x128xf32, #tpu.memory_space<vmem>>, vector<8x128xf32>,
    %c0_i32_24 = arith.constant 0 : i32
    %30 = arith.cmpi eq, %arg1, %c0_i32_24 : i32
    %31 = arith.extui %30 : i1 to i32
    %c0_i32_25 = arith.constant 0 : i32
    %32 = arith.cmpi ne, %31, %c0_i32_25 : i32
    scf.if %32 {
      %c0_26 = arith.constant 0 : index
      %c0_27 = arith.constant 0 : index
      %33 = vector.load %arg11[%c0_26, %c0_27] : memref<8x128xf32, #tpu.memory_space<vmem>>, vector<8x128xf32>
      %c0_28 = arith.constant 0 : index
      %c0_29 = arith.constant 0 : index
      %c0_30 = arith.constant 0 : index
      %34 = vector.load %arg8[%c0_28, %c0_29, %c0_30] : memref<1x8x128xf32, #tpu.memory_space<vmem>>, vector<1x8x128xf32>
      %35 = vector.shape_cast %34 : vector<1x8x128xf32> to vector<8x128xf32>
      %36 = vector.shape_cast %33 : vector<8x128xf32> to vector<1x8x128xf32>
      tpu.vector_store %arg8[%c0_28, %c0_29, %c0_30], %36 {strides = array<i32>} : memref<1x8x128xf32, #tpu.memory_space<vmem>>, vector<1x8x128xf32>,
    } else {
    }
    return
  }
  func.func @transform_0(%arg0: i32, %arg1: i32) -> (i32, i32, i32) {
    %c0_i32 = arith.constant 0 : i32
    %c0_i32_0 = arith.constant 0 : i32
    %c0_i32_1 = arith.constant 0 : i32
    return %arg0, %c0_i32, %c0_i32_0 : i32, i32, i32
  }
  func.func @transform_1(%arg0: i32, %arg1: i32) -> (i32, i32, i32) {
    %c0_i32 = arith.constant 0 : i32
    %c0_i32_0 = arith.constant 0 : i32
    return %arg0, %arg1, %c0_i32 : i32, i32, i32
  }
  func.func @transform_2(%arg0: i32, %arg1: i32) -> (i32, i32, i32) {
    %c0_i32 = arith.constant 0 : i32
    %c0_i32_0 = arith.constant 0 : i32
    return %arg0, %arg1, %c0_i32 : i32, i32, i32
  }
  func.func @transform_3(%arg0: i32, %arg1: i32) -> (i32, i32) {
    %c0_i32 = arith.constant 0 : i32
    %c0_i32_0 = arith.constant 0 : i32
    %c0_i32_1 = arith.constant 0 : i32
    return %c0_i32, %c0_i32_0 : i32, i32
  }
  func.func @transform_4(%arg0: i32, %arg1: i32) -> (i32, i32) {
    %c0_i32 = arith.constant 0 : i32
    %c0_i32_0 = arith.constant 0 : i32
    %c0_i32_1 = arith.constant 0 : i32
    return %c0_i32, %c0_i32_0 : i32, i32
  }
  func.func @transform_5(%arg0: i32, %arg1: i32) -> (i32, i32) {
    %c0_i32 = arith.constant 0 : i32
    %c0_i32_0 = arith.constant 0 : i32
    %c0_i32_1 = arith.constant 0 : i32
    return %c0_i32, %c0_i32_0 : i32, i32
  }
  func.func @transform_6(%arg0: i32, %arg1: i32) -> (i32, i32, i32) {
    %c0_i32 = arith.constant 0 : i32
    %c0_i32_0 = arith.constant 0 : i32
    %c0_i32_1 = arith.constant 0 : i32
    return %arg0, %c0_i32, %c0_i32_0 : i32, i32, i32
  }
  func.func @transform_7(%arg0: i32, %arg1: i32) -> (i32, i32, i32) {
    %c0_i32 = arith.constant 0 : i32
    %c0_i32_0 = arith.constant 0 : i32
    return %arg0, %c0_i32, %arg1 : i32, i32, i32
  }
}

</mosaic_0001>

<bundles_post_ra>
// kernel: tpu_custom_call.1
= control target key start
LH: loop header
LB: loop body
LE: loop exit
PB: predicated region body
PF: predicated region fallthrough
CT: control target
= control target key end

     0   :  { %s2420_s0 = inlined_call_operand.hbm [shape: f32[2,8,32], index: 0, kind: input, shape index: {}]   ;;  %s2421_s1 = inlined_call_operand.hbm [shape: f32[2,8,32], index: 1, kind: input, shape index: {}]   ;;  %s2422_s2 = inlined_call_operand.hbm [shape: f32[2,8,32], index: 2, kind: input, shape index: {}]   ;;  %s2423_s3 = inlined_call_operand.hbm [shape: f32[32,128], index: 3, kind: input, shape index: {}]   ;;  %s2424_s4 = inlined_call_operand.hbm [shape: f32[32,128], index: 4, kind: input, shape index: {}]   ;;  %s2425_s5 = inlined_call_operand.hbm [shape: f32[32,128], index: 5, kind: input, shape index: {}]   ;;  %s2426_s6 = inlined_call_operand.hbm [shape: f32[2,8,128], index: 6, kind: output, shape index: {0}]   ;;  %s2427_s7 = inlined_call_operand.hbm [shape: f32[2,8,8], index: 7, kind: output, shape index: {1}]  }
   0x1   :  { %2440 = sst [smem:[#allocation30_spill]] %s2421_s1 }
   0x2   :  { %2441 = sst [smem:[#allocation31_spill]] %s2423_s3 }
   0x3   :  { %2442 = sst [smem:[#allocation32_spill]] %s2424_s4 }
   0x4   :  { %2443 = sst [smem:[#allocation33_spill]] %s2425_s5 }
   0x5   :  { %2444 = sst [smem:[#allocation34_spill]] %s2426_s6 }
   0x6   :  { %13 = vsyncpa [#allocation5], 0 }
   0x7   :  { %15 = vsyncpa [#allocation5 + $0x1], 0 }
   0x8   :  { %16 = vsyncpa [#allocation8], 0 }
   0x9   :  { %18 = vsyncpa [#allocation8 + $0x1], 0 }
   0xa   :  { %19 = vsyncpa [#allocation11], 0 }
   0xb   :  { %20 = vsyncpa [#allocation14], 0 }
   0xc   :  { %21 = vsyncpa [#allocation6], 0 }
   0xd   :  { %23 = vsyncpa [#allocation6 + $0x1], 0 }
   0xe   :  { %24 = vsyncpa [#allocation17], 0 }
   0xf   :  { %26 = vsyncpa [#allocation17 + $0x1], 0  ;;  %s2095_s24 = smov 0   ;;  %s2097_s25 = smov 0  }
  0x10   :  { %s2099_s26 = smov 0   ;;  %s2101_s27 = smov 0  }
  0x11   :  { %s2103_s28 = smov 0   ;;  %s2105_s29 = smov 0  }
  0x12 LB: > { %2445 = sst [smem:[#allocation24_spill]] %s2028_s24  ;;  %s2126_s30 = sadd.s32 4294967295, %s2048_s29   ;;  %s2048_s29 = sphi %s2105_s29, %s32_s29   ;;  %s2044_s28 = sphi %s2103_s28, %s2471_s28   ;;  %s2040_s27 = sphi %s2101_s27, %s2470_s27   ;;  %s2036_s26 = sphi %s2099_s26, %s2474_s26   ;;  %s2032_s25 = sphi %s2097_s25, %s2473_s25   ;;  %s2028_s24 = sphi %s2095_s24, %s2472_s24  }
  0x13   : > { %2446 = sst [smem:[#allocation25_spill]] %s2044_s28  ;;  %p1602_p0 = scmp.ge.s32.totalorder %s2048_s29, 1 }
  0x14   : > { %2447 = sst [smem:[#allocation26_spill]] %s2048_s29  ;;  %p65_p1 = scmp.eq.s32.totalorder %s2126_s30, 0 }
  0x15   : > { %p248_p2 = scmp.lt.s32.totalorder %s2048_s29, 3  ;;  %s2448_s3 = sld [smem:[#allocation31_spill]] }
  0x16   : > { %s2050_s12 = smov [#allocation10]   ;;  %p1606_p6 = scmp.ge.s32.totalorder %s2048_s29, 2 }
  0x17   : > { %p2134_p3 = pnand %p1602_p0, %p248_p2  ;;  %s261_s13 = sshll.u32 %s2050_s12, 4  ;;  %s262_s13 = int_to_ptr.vmem [resolvable:$true] %s261_s13 }
  0x18   : > { %s2428_s15 = smov 128   ;;  %s2430_s16 = smov 8  }
  0x19   : > { %p1650_p4 = pneg %p2134_p3  ;;  %s1601_s17 = sadd.s32 4294967294, %s2048_s29  }
  0x1a   : > { %s44_s18 = sadd.s32 1, %s2044_s28  ;;  %s51_s19 = sadd.s32 1, %s2036_s26 }
  0x1b   : > { %s259_s10 = sshll.u32 %s2448_s3, 4  ;;  %p2142_p5 = pnand %p1650_p4, %p65_p1  ;;  %s260_s10 = int_to_ptr.hbm [resolvable:$true] %s259_s10 }
  0x1c   : > { %p46_p7 = scmp.ge.s32.totalorder %s44_s18, 2  ;;  %p58_p8 = scmp.ne.s32.totalorder %s2036_s26, %s2032_s25 }
  0x1d   : > { %1653 = dma.hbm_to_vmem [thread:$0]  (!%p2142_p5), %s260_s10, 512, %s262_s13, [#allocation11], %s2428_s15, %s2428_s15, %s2430_s16  }
  0x1e   : > { %p59_p9 = scmp.eq.s32.totalorder %s2048_s29, 0  ;;  %p64_p10 = scmp.ne.s32.totalorder %s2032_s25, %s2028_s24 }
  0x1f   : > { %s2476_s18 = smov (%p46_p7, %s44_s18), 0  ;;  %p207_p13 = scmp.eq.s32.totalorder %s2126_s30, 1 }
  0x20   : > { %2451 = sst [smem:[#allocation27_spill]] %s2476_s18  ;;  %p2162_p11 = por %p59_p9, %p58_p8 }
  0x21   : > { %p2168_p12 = por %p65_p1, %p64_p10  ;;  %s48_s22 = ssub.s32 %s2044_s28, %s2476_s18 }
  0x22   : > { %p49_p0 = scmp.eq.s32.totalorder %s48_s22, 0  ;;  %p213_p2 = scmp.eq.s32.totalorder %s1601_s17, 1 }
  0x23   : > { %p2175_p4 = por %p207_p13, %p58_p8  ;;  %p1680_p7 = scmp.lt.s32.totalorder %s2048_s29, 2 }
  0x24   : > { %s2181_s8 = scalar_select %p49_p0, %s2036_s26, %s51_s19  }
  0x25   : > { %p2183_p9 = por %p213_p2, %p64_p10  ;;  %s2433_s10 = sand.u32 1, %s2036_s26  }
  0x26   : > { %2455 = sst [smem:[#allocation28_spill]] %s2181_s8  ;;  %s2190_s12 = sshll.u32 %s2433_s10, 3 }
  0x27   : > { %s2456_s9 = scalar_select %p2183_p9, 1, 0 }
  0x28   : > { %s2193_s13 = sshll.u32 %s2044_s28, 3  ;;  %p2197_p8 = pnand %p1680_p7, %p2162_p11 }
  0x29   : > { %2457 = sst [smem:[#allocation29_spill]] %s2456_s9  ;;  %s322_s19 = sand.u32 1, %s2048_s29  }
  0x2a   : > { %s2459_s1 = sld [smem:[#allocation30_spill]]  ;;  %s326_s18 = scalar_lea.vmem [#allocation7], %s2190_s12 }
  0x2b   : > { %s335_s10 = sshll.u32 %s326_s18, 4  ;;  %s2207_s20 = scalar_lea.sflag [#allocation8], %s322_s19  ;;  %s336_s10 = int_to_ptr.vmem [resolvable:$true] %s335_s10 }
  0x2c   : > { %s2460_s4 = sld [smem:[#allocation32_spill]]  ;;  %s2053_s15 = smov [#allocation12]  }
  0x2d   : > { %s2461_s5 = sld [smem:[#allocation33_spill]]  ;;  %s2462_s19 = smov 8  }
  0x2e   : > { %s2463_s9 = smov 128   ;;  %s307_s18 = scalar_lea.vmem [#allocation4], %s2190_s12 }
  0x2f   : > { %s315_s22 = sshll.u32 %s307_s18, 4  ;;  %s346_s24 = scalar_lea.vmem [#allocation9], %s2190_s12  ;;  %s316_s22 = int_to_ptr.vmem [resolvable:$true] %s315_s22 }
  0x30   : > { %s331_s16 = scalar_lea.hbm %s2459_s1, %s2193_s13  ;;  %s355_s6 = sshll.u32 %s346_s24, 4  ;;  %s356_s6 = int_to_ptr.vmem [resolvable:$true] %s355_s6 }
  0x31   : > { %s333_s3 = sshll.u32 %s331_s16, 4  ;;  %s275_s16 = sshll.u32 %s2053_s15, 4  ;;  %s334_s3 = int_to_ptr.hbm [resolvable:$true] %s333_s3  ;;  %s276_s16 = int_to_ptr.vmem [resolvable:$true] %s275_s16 }
  0x32   : > { %1666 = dma.hbm_to_vmem [thread:$0]  (!%p2197_p8), %s334_s3, 128, %s336_s10, %s2207_s20  }
  0x33   : > { %s273_s29 = sshll.u32 %s2460_s4, 4  ;;  %s287_s1 = sshll.u32 %s2461_s5, 4  ;;  %s274_s29 = int_to_ptr.hbm [resolvable:$true] %s273_s29  ;;  %s288_s1 = int_to_ptr.hbm [resolvable:$true] %s287_s1 }
  0x34   : > { %1656 = dma.hbm_to_vmem [thread:$0]  (!%p2142_p5), %s274_s29, 512, %s276_s16, [#allocation11], %s2463_s9, %s2463_s9, %s2462_s19  }
  0x35   : > { %s2054_s3 = smov [#allocation13]   ;;  %s311_s15 = scalar_lea.hbm %s2420_s0, %s2193_s13 }
  0x36   : > { %s289_s28 = sshll.u32 %s2054_s3, 4  ;;  %s313_s4 = sshll.u32 %s311_s15, 4  ;;  %s290_s28 = int_to_ptr.vmem [resolvable:$true] %s289_s28  ;;  %s314_s4 = int_to_ptr.hbm [resolvable:$true] %s313_s4 }
  0x37   : > { %1659 = dma.hbm_to_vmem [thread:$0]  (!%p2142_p5), %s288_s1, 512, %s290_s28, [#allocation14], %s2463_s9, %s2463_s9, %s2462_s19  }
  0x38   : > { %s2464_s29 = sand.u32 1, %s2036_s26   ;;  %s351_s5 = scalar_lea.hbm %s2422_s2, %s2193_s13 }
  0x39   : > { %s304_s16 = scalar_lea.sflag [#allocation5], %s2464_s29  ;;  %s353_s1 = sshll.u32 %s351_s5, 4  ;;  %s354_s1 = int_to_ptr.hbm [resolvable:$true] %s353_s1 }
  0x3a   : > { %1663 = dma.hbm_to_vmem [thread:$0]  (!%p2197_p8), %s314_s4, 128, %s316_s22, %s304_s16  }
  0x3b   : > { %1669 = dma.hbm_to_vmem [thread:$0]  (!%p2197_p8), %s354_s1, 128, %s356_s6, %s2207_s20  }
  0x3c   : > { %364 = sbr.rel (%p2134_p3) target bundleno = 604 (0x25c), region = 44  ;;  %s2248_s9 = sand.u32 (!%p2134_p3), 1, %s2032_s25  }
  0x3d   : > { %s2251_s4 = sshll.u32 (!%p2134_p3), %s2248_s9, 3  ;;  %s367_s13 = scalar_lea.sflag (!%p2134_p3), [#allocation5], %s2248_s9 }
  0x3e   : > { %s370_s12 = scalar_lea.vmem (!%p2134_p3), [#allocation4], %s2251_s4 }
  0x41   : > { %2003 = dma.done.wait (%p2168_p12), %s367_s13, 128  }
  0x42   : > { %2005 = vsyncadd (%p2168_p12), %s367_s13, 4294967168  ;;  %s376_s5 = sand.u32 1, %s2126_s30   ;;  %s380_s24 = scalar_lea.vmem [#allocation7], %s2251_s4 }
  0x43   : > { %s377_s6 = scalar_lea.sflag [#allocation8], %s376_s5 }
  0x44   : > { %2007 = dma.done.wait (%p2168_p12), %s377_s6, 256  }
  0x45   : > { %2009 = vsyncadd (%p2168_p12), %s377_s6, 4294967040  ;;  %s390_s11 = scalar_lea.vmem [#allocation9], %s2251_s4 }
  0x46   : > { %2011 = dma.done.wait (%p65_p1), [#allocation11], 1024  }
  0x47   : > { %2013 = vsyncadd (%p65_p1), [#allocation11], 4294966272 }
  0x48   : > { %2015 = dma.done.wait (%p65_p1), [#allocation14], 512  }
  0x49   : > { %2017 = vsyncadd (%p65_p1), [#allocation14], 4294966784  ;;  %vm461_vm0 = vcmask 261120   ;;  %v460_v0 = vld [vmem:[#allocation10 + $0x18] sm:$0xff]  ;;  %v459_v1 = vld [vmem:[#allocation10 + $0x10] sm:$0xff]  ;;  %vm1187_vm1 = vcmask 64512  }
  0x4a   : > { %v458_v2 = vld [vmem:[#allocation10 + $0x8] sm:$0xff]  ;;  %v2274_v3 = vand.u32 4294901760, %v460_v0  ;;  %v2276_v4 = vand.u32 4294901760, %v459_v1  ;;  %v457_v6 = vld [vmem:[#allocation10] sm:$0xff]  ;;  %v456_v7 = vld [vmem:[%s370_s12] sm:$0xff]  ;;  %s451_s30 = scalar_lea.vmem [#allocation16], %s2251_s4 }
  0x4b   : > { %v2278_v5 = vand.u32 4294901760, %v458_v2  ;;  %v657_v8 = vld [vmem:[#allocation12 + $0x18] sm:$0xff]  ;;  %v2280_v9 = vand.u32 4294901760, %v457_v6  ;;  %v463_v10 = vsel %vm461_vm0, %v456_v7, 0  ;;  %v656_v12 = vld [vmem:[#allocation12 + $0x10] sm:$0xff]  ;;  %v655_v13 = vld [vmem:[#allocation12 + $0x8] sm:$0xff] }
  0x4c   : > { %v2283_v11 = vand.u32 4294901760, %v657_v8  ;;  %478 = vmatpush.msra.mxu0 %v2274_v3  ;;  %v507_v14 = vsub.f32 %v460_v0, %v2274_v3  ;;  %578 = vmatpush.msra.mxu3 %v2274_v3  ;;  %v513_v15 = vsub.f32 %v459_v1, %v2276_v4  ;;  %v2292_v17 = vand.u32 4294901760, %v463_v10  ;;  %v654_v37 = vld [vmem:[#allocation12] sm:$0xff]  ;;  %v851_v62 = vld [vmem:[#allocation13 + $0x18] sm:$0xff]  ;;  %v850_v0 = vld [vmem:[#allocation13 + $0x10] sm:$0xff]  ;;  %s1624_s21 = sshll.u32 %s2040_s27, 3 }
  0x4d   : > { %v2290_v16 = vsub.f32 %v458_v2, %v2278_v5  ;;  %v2295_v18 = vsub.f32 %v457_v6, %v2280_v9  ;;  %v2300_v20 = vand.u32 4294901760, %v656_v12  ;;  %v2302_v21 = vand.u32 4294901760, %v655_v13  ;;  %v653_v38 = vld [vmem:[%s380_s24] sm:$0xff]  ;;  %s1409_s19 = scalar_lea.hbm %s2427_s7, %s1624_s21  ;;  %s1411_s28 = sshll.u32 %s451_s30, 4  ;;  %s1412_s28 = int_to_ptr.vmem [resolvable:$true] %s1411_s28 }
  0x4e   : > { %v2298_v19 = vsub.f32 %v657_v8, %v2283_v11  ;;  %549 = vmatpush.msra.mxu2 %v507_v14  ;;  %480 = vmatpush.msra.mxu0 %v2276_v4  ;;  %v508_v22 = vand.u32 4294901760, %v507_v14  ;;  %v514_v23 = vand.u32 4294901760, %v513_v15  ;;  %v486_v24 = vsub.f32 %v463_v10, %v2292_v17  ;;  %v848_v7 = vld [vmem:[#allocation13] sm:$0xff]  ;;  %s1413_s8 = sshll.u32 %s1409_s19, 4  ;;  %s1384_s10 = scalar_lea.sflag [#allocation17], %s2248_s9  ;;  %s1414_s8 = int_to_ptr.hbm [resolvable:$true] %s1413_s8 }
  0x4f   : > { %v520_v25 = vand.u32 4294901760, %v2290_v16  ;;  %580 = vmatpush.msra.mxu3 %v2276_v4  ;;  %v526_v27 = vand.u32 4294901760, %v2295_v18  ;;  %v2311_v28 = vsub.f32 %v656_v12, %v2300_v20  ;;  %v2314_v29 = vsub.f32 %v655_v13, %v2302_v21  ;;  %v847_v12 = vld [vmem:[%s390_s11] sm:$0xff]  ;;  %s1936_s15 = sshra.s32 %s1414_s8, 4  ;;  %s1942_s27 = scalar_lea.hbm %s2427_s7, 16  ;;  %s1937_s15 = int_to_ptr.hbm [resolvable:$true] %s1936_s15 }
  0x50   : > { %v705_v26 = vand.u32 4294901760, %v2298_v19  ;;  %552 = vmatpush.msra.mxu2 %v513_v15  ;;  %482 = vmatpush.msra.mxu0 %v2278_v5  ;;  %v509_v30 = vsub.f32 %v507_v14, %v508_v22  ;;  %v515_v31 = vsub.f32 %v513_v15, %v514_v23  ;;  %v487_v32 = vand.u32 4294901760, %v486_v24  ;;  %s1938_s18 = scalar_lea.hbm %s1937_s15, 8  ;;  %p1943_p10 = scmp.lt.s32.totalorder %s1937_s15, %s2427_s7 }
  0x51   : > { %v521_v33 = vsub.f32 %v2290_v16, %v520_v25  ;;  %582 = vmatpush.msra.mxu3 %v2278_v5  ;;  %v711_v35 = vand.u32 4294901760, %v2311_v28  ;;  %v717_v36 = vand.u32 4294901760, %v2314_v29  ;;  %v527_v42 = vsub.f32 %v2295_v18, %v526_v27  ;;  %p1939_p1 = scmp.ne.s32.totalorder %s1937_s15, %s1938_s18  ;;  %p1944_p11 = scmp.lt.s32.totalorder %s1942_s27, %s1938_s18 }
  0x52   : > { %v706_v34 = vsub.f32 %v2298_v19, %v705_v26  ;;  %v510_v39 = vand.u32 4294901760, %v509_v30  ;;  %555 = vmatpush.msra.mxu2 %v2290_v16  ;;  %484 = vmatpush.msra.mxu0 %v2280_v9  ;;  %v516_v40 = vand.u32 4294901760, %v515_v31  ;;  %v488_v41 = vsub.f32 %v486_v24, %v487_v32 }
  0x53   : > { %584 = vmatpush.msra.mxu3 %v2280_v9  ;;  %v522_v43 = vand.u32 4294901760, %v521_v33  ;;  %v712_v45 = vsub.f32 %v2311_v28, %v711_v35  ;;  %v718_v47 = vsub.f32 %v2314_v29, %v717_v36  ;;  %v680_v48 = vand.u32 4294901760, %v654_v37  ;;  %p1940_p3 = pnand %p1939_p1, %p2175_p4  ;;  %p1945_p12 = por %p1944_p11, %p1943_p10 }
  0x54   : > { %607 = vmatpush.msrb.mxu0 %v508_v22  ;;  %v707_v44 = vand.u32 4294901760, %v706_v34  ;;  %511 = vmatpush.msra.mxu1 %v510_v39  ;;  %v489_v46 = vand.u32 4294901760, %v488_v41  ;;  %v660_v49 = vsel %vm461_vm0, %v653_v38, 0  ;;  %v528_v52 = vand.u32 4294901760, %v527_v42 }
  0x55   : > { %558 = vmatpush.msra.mxu2 %v2295_v18  ;;  %588 = vmatmul.f32.vlgmr.msra.gmra.mxu3 %v487_v32  ;;  %v713_v50 = vand.u32 4294901760, %v712_v45  ;;  %v682_v51 = vand.u32 4294901760, %v660_v49  ;;  %v722_v53 = vsub.f32 %v654_v37, %v680_v48  ;;  %v719_v55 = vand.u32 4294901760, %v718_v47  ;;  %p1941_p5 = pneg %p1940_p3 }
  0x56   : > { %561 = vmatmul.f32.vlgmr.msra.gmra.mxu2 %v486_v24  ;;  %517 = vmatpush.msra.mxu1 %v516_v40  ;;  %v867_v63 = vand.u32 4294901760, %v851_v62  ;;  %v869_v2 = vand.u32 4294901760, %v850_v0 }
  0x57   : > { %490 = vmatmul.f32.vlgmr.msra.gmra.mxu0 %v489_v46  ;;  %675 = vmatpush.msrb.mxu2 %v2283_v11  ;;  %v683_v54 = vsub.f32 %v660_v49, %v682_v51  ;;  %v723_v56 = vand.u32 4294901760, %v722_v53  ;;  %p1946_p13 = pnand %p1945_p12, %p1941_p5 }
  0x58   : > { %708 = vmatpush.msrb.mxu3 %v707_v44  ;;  %523 = vmatpush.msra.mxu1 %v522_v43  ;;  %v897_v1 = vsub.f32 %v851_v62, %v867_v63 }
  0x59   : > { %611 = vmatpush.msrb.mxu0 %v514_v23  ;;  %677 = vmatpush.msrb.mxu2 %v2300_v20  ;;  %v684_v57 = vand.u32 4294901760, %v683_v54  ;;  %v724_v58 = vsub.f32 %v722_v53, %v723_v56 }
  0x5a   : > { %714 = vmatpush.msrb.mxu3 %v713_v50  ;;  %529 = vmatpush.msra.mxu1 %v528_v52 }
  0x5b   : > { %615 = vmatpush.msrb.mxu0 %v520_v25  ;;  %531 = vmatmul.f32.vlgmr.msra.gmra.mxu1 %v2292_v17  ;;  %v685_v59 = vsub.f32 %v683_v54, %v684_v57  ;;  %v725_v60 = vand.u32 4294901760, %v724_v58 }
  0x5c   : > { %679 = vmatpush.msrb.mxu2 %v2302_v21  ;;  %638 = vmatpush.msrb.mxu1 %v2274_v3  ;;  %v849_v3 = vld [vmem:[#allocation13 + $0x8] sm:$0xff] }
  0x5d   : > { %720 = vmatpush.msrb.mxu3 %v719_v55  ;;  %619 = vmatpush.msrb.mxu0 %v526_v27  ;;  %v686_v61 = vand.u32 4294901760, %v685_v59  ;;  %v871_v6 = vand.u32 4294901760, %v849_v3 }
  0x5e   : > { %681 = vmatpush.msrb.mxu2 %v680_v48  ;;  %640 = vmatpush.msrb.mxu1 %v2276_v4  ;;  %v898_v4 = vand.u32 4294901760, %v897_v1 }
  0x5f   : > { %726 = vmatpush.msrb.mxu3 %v725_v60  ;;  %621 = vmatmul.f32.vlgmr.msrb.gmra.mxu0 %v2292_v17  ;;  %v909_v10 = vsub.f32 %v849_v3, %v871_v6 }
  0x60   : > { %687 = vmatmul.f32.vlgmr.msrb.gmra.mxu2 %v686_v61  ;;  %728 = vmatmul.f32.vlgmr.msrb.gmra.mxu3 %v682_v51  ;;  %v899_v8 = vsub.f32 %v897_v1, %v898_v4 }
  0x61   : > { %642 = vmatpush.msrb.mxu1 %v2278_v5  ;;  %746 = vmatpush.msra.mxu0 %v2298_v19  ;;  %v903_v5 = vsub.f32 %v850_v0, %v869_v2  ;;  %v910_v15 = vand.u32 4294901760, %v909_v10 }
  0x62   : > { %804 = vmatpush.msra.mxu2 %v705_v26  ;;  %835 = vmatpush.msra.mxu3 %v2283_v11  ;;  %v900_v13 = vand.u32 4294901760, %v899_v8 }
  0x63   : > { %644 = vmatpush.msrb.mxu1 %v2280_v9  ;;  %749 = vmatpush.msra.mxu0 %v2311_v28  ;;  %v904_v9 = vand.u32 4294901760, %v903_v5  ;;  %v911_v19 = vsub.f32 %v909_v10, %v910_v15 }
  0x64   : > { %808 = vmatpush.msra.mxu2 %v711_v35  ;;  %646 = vmatmul.f32.vlgmr.msrb.gmra.mxu1 %v2292_v17  ;;  %v853_v17 = vsel %vm461_vm0, %v847_v12, 0 }
  0x65   : > { %837 = vmatpush.msra.mxu3 %v2300_v20  ;;  %752 = vmatpush.msra.mxu0 %v2314_v29  ;;  %v905_v14 = vsub.f32 %v903_v5, %v904_v9  ;;  %v912_v22 = vand.u32 4294901760, %v911_v19 }
  0x66   : > { %775 = vmatpush.msra.mxu1 %v2283_v11  ;;  %812 = vmatpush.msra.mxu2 %v717_v36  ;;  %v873_v11 = vand.u32 4294901760, %v848_v7 }
  0x67   : > { %839 = vmatpush.msra.mxu3 %v2302_v21  ;;  %755 = vmatpush.msra.mxu0 %v722_v53  ;;  %v906_v18 = vand.u32 4294901760, %v905_v14 }
  0x68   : > { %777 = vmatpush.msra.mxu1 %v2300_v20  ;;  %816 = vmatpush.msra.mxu2 %v723_v56  ;;  %v915_v16 = vsub.f32 %v848_v7, %v873_v11 }
  0x69   : > { %758 = vmatmul.f32.vlgmr.msra.gmra.mxu0 %v683_v54  ;;  %818 = vmatmul.f32.vlgmr.msra.gmra.mxu2 %v682_v51 }
  0x6a   : > { %779 = vmatpush.msra.mxu1 %v2302_v21  ;;  %841 = vmatpush.msra.mxu3 %v680_v48  ;;  %v916_v20 = vand.u32 4294901760, %v915_v16  ;;  %v875_v21 = vand.u32 4294901760, %v853_v17 }
  0x6b   : > { %843 = vmatmul.f32.vlgmr.msra.gmra.mxu3 %v682_v51  ;;  %868 = vmatpush.msrb.mxu0 %v867_v63 }
  0x6c   : > { %781 = vmatpush.msra.mxu1 %v680_v48  ;;  %968 = vmatpush.msrb.mxu3 %v867_v63  ;;  %v917_v23 = vsub.f32 %v915_v16, %v916_v20  ;;  %v876_v24 = vsub.f32 %v853_v17, %v875_v21 }
  0x6d   : > { %785 = vmatmul.f32.vlgmr.msra.gmra.mxu1 %v684_v57  ;;  %870 = vmatpush.msrb.mxu0 %v869_v2 }
  0x6e   : > { %939 = vmatpush.msrb.mxu2 %v897_v1  ;;  %970 = vmatpush.msrb.mxu3 %v869_v2  ;;  %v918_v25 = vand.u32 4294901760, %v917_v23  ;;  %v877_v26 = vand.u32 4294901760, %v876_v24 }
  0x6f   : > { %872 = vmatpush.msrb.mxu0 %v871_v6  ;;  %901 = vmatpush.msrb.mxu1 %v900_v13 }
  0x70   : > { %942 = vmatpush.msrb.mxu2 %v903_v5  ;;  %972 = vmatpush.msrb.mxu3 %v871_v6  ;;  %v878_v27 = vsub.f32 %v876_v24, %v877_v26 }
  0x71   : > { %874 = vmatpush.msrb.mxu0 %v873_v11  ;;  %907 = vmatpush.msrb.mxu1 %v906_v18 }
  0x72   : > { %945 = vmatpush.msrb.mxu2 %v909_v10  ;;  %974 = vmatpush.msrb.mxu3 %v873_v11  ;;  %v879_v28 = vand.u32 4294901760, %v878_v27 }
  0x73   : > { %997 = vmatpush.msra.mxu0 %v898_v4  ;;  %913 = vmatpush.msrb.mxu1 %v912_v22 }
  0x74   : > { %948 = vmatpush.msrb.mxu2 %v915_v16  ;;  %978 = vmatmul.f32.vlgmr.msrb.gmra.mxu3 %v877_v26 }
  0x75   : > { %1001 = vmatpush.msra.mxu0 %v904_v9  ;;  %951 = vmatmul.f32.vlgmr.msrb.gmra.mxu2 %v876_v24 }
  0x76   : > { %919 = vmatpush.msrb.mxu1 %v918_v25  ;;  %880 = vmatmul.f32.vlgmr.msrb.gmra.mxu0 %v879_v28 }
  0x77   : > { %1005 = vmatpush.msra.mxu0 %v910_v15  ;;  %921 = vmatmul.f32.vlgmr.msrb.gmra.mxu1 %v875_v21 }
  0x78   : > { %1028 = vmatpush.msra.mxu1 %v867_v63 }
  0x79   : > { %1009 = vmatpush.msra.mxu0 %v916_v20 }
  0x7a   : > { %1030 = vmatpush.msra.mxu1 %v869_v2 }
  0x7c   : > { %1032 = vmatpush.msra.mxu1 %v871_v6 }
  0x7e   : > { %1034 = vmatpush.msra.mxu1 %v873_v11  ;;  %1011 = vmatmul.f32.vlgmr.msra.gmra.mxu0 %v875_v21 }
  0x7f   : > { %1036 = vmatmul.f32.vlgmr.msra.gmra.mxu1 %v875_v21 }
  0xd4   : > { %v491_v29 = vpop.f32.mrf.mxu0 }
  0xd8   : > { %v532_v30 = vpop.f32.mrf.mxu1  ;;  %v589_v33 = vpop.f32.mrf.mxu3 }
  0xd9   : > { %v562_v31 = vpop.f32.mrf.mxu2  ;;  %v533_v32 = vadd.f32 %v532_v30, %v491_v29 }
  0xdb   : > { %v563_v34 = vadd.f32 %v562_v31, %v533_v32 }
  0xdc   : > { %v622_v35 = vpop.f32.mrf.mxu0 }
  0xdd   : > { %v590_v36 = vadd.f32 %v589_v33, %v563_v34 }
  0xdf   : > { %v623_v37 = vadd.f32 %v622_v35, %v590_v36 }
  0xe1   : > { %v647_v38 = vpop.f32.mrf.mxu1 }
  0xe2   : > { %v648_v39 = vadd.f32 %v647_v38, %v623_v37 }
  0xe3   : > { %v688_v40 = vpop.f32.mrf.mxu2  ;;  %v729_v41 = vpop.f32.mrf.mxu3 }
  0xe4   : > { %v650_v42 = vmul.f32 0.25, %v648_v39  ;;  %v730_v43 = vadd.f32 %v729_v41, %v688_v40 }
  0xe6   : > { %v759_v44 = vpop.f32.mrf.mxu0  ;;  %v1058_v45 = vand.u32 4294901760, %v650_v42 }
  0xe7   : > { %v760_v47 = vadd.f32 %v759_v44, %v730_v43 }
  0xe8   : > { %v1059_v46 = vsub.f32 %v650_v42, %v1058_v45 }
  0xea   : > { %v786_v48 = vpop.f32.mrf.mxu1  ;;  %v1060_v50 = vand.u32 4294901760, %v1059_v46 }
  0xeb   : > { %v787_v49 = vadd.f32 %v786_v48, %v760_v47 }
  0xec   : > { %v819_v51 = vpop.f32.mrf.mxu2  ;;  %v1061_v55 = vsub.f32 %v1059_v46, %v1060_v50 }
  0xed   : > { %v820_v52 = vadd.f32 %v819_v51, %v787_v49 }
  0xee   : > { %v844_v53 = vpop.f32.mrf.mxu3  ;;  %v1062_v58 = vand.u32 4294901760, %v1061_v55 }
  0xef   : > { %v845_v54 = vadd.f32 %v844_v53, %v820_v52 }
  0xf1   : > { %v1056_v56 = vand.u32 4294901760, %v845_v54 }
  0xf3   : > { %v1083_v57 = vsub.f32 %v845_v54, %v1056_v56  ;;  %1057 = vmatpush.xpose.msra.mxu2 %v1056_v56  ;;  %1133 = vmatpush.xpose.msrb.mxu1 %v1056_v56  ;;  %v881_v63 = vpop.f32.mrf.mxu0 }
  0xf4   : > { %v922_v62 = vpop.f32.mrf.mxu1 }
  0xf5   : > { %v1084_v59 = vand.u32 4294901760, %v1083_v57  ;;  %1110 = vmatpush.xpose.msrb.mxu0 %v1083_v57  ;;  %v923_v1 = vadd.f32 %v922_v62, %v881_v63 }
  0xf6   : > { %1063 = vmatmul.f32.vlgmr.msra.gmra.mxu2 %v1062_v58  ;;  %1137 = vmatmul.f32.vlgmr.msrb.gmra.mxu1 %v1060_v50 }
  0xf7   : > { %v1085_v60 = vsub.f32 %v1083_v57, %v1084_v59  ;;  %1159 = vmatpush.xpose.msrb.mxu2 %v1084_v59  ;;  %v979_v2 = vpop.f32.mrf.mxu3 }
  0xf8   : > { %1113 = vmatmul.f32.vlgmr.msrb.gmra.mxu0 %v1059_v46  ;;  %v952_v0 = vpop.f32.mrf.mxu2 }
  0xf9   : > { %v1086_v61 = vand.u32 4294901760, %v1085_v60  ;;  %v953_v3 = vadd.f32 %v952_v0, %v923_v1 }
  0xfb   : > { %1087 = vmatpush.xpose.msra.mxu3 %v1086_v61  ;;  %v980_v4 = vadd.f32 %v979_v2, %v953_v3  ;;  %v1012_v5 = vpop.f32.mrf.mxu0 }
  0xfc   : > { %v1037_v7 = vpop.f32.mrf.mxu1 }
  0xfd   : > { %v1013_v6 = vadd.f32 %v1012_v5, %v980_v4 }
  0xfe   : > { %1089 = vmatmul.f32.vlgmr.msra.gmra.mxu3 %v1058_v45  ;;  %1161 = vmatmul.f32.vlgmr.msrb.gmra.mxu2 %v1058_v45 }
  0xff   : > { %1181 = vmatpush.xpose.msrb.mxu3 %v1056_v56  ;;  %v1038_v8 = vadd.f32 %v1037_v7, %v1013_v6 }
 0x101   : > { %v1240_v9 = vand.u32 4294901760, %v1038_v8 }
 0x103   : > { %v1267_v10 = vsub.f32 %v1038_v8, %v1240_v9  ;;  %1241 = vmatpush.msra.mxu0 %v1240_v9  ;;  %1317 = vmatpush.msra.mxu3 %v1240_v9 }
 0x105   : > { %1294 = vmatpush.msra.mxu2 %v1267_v10  ;;  %v1268_v11 = vand.u32 4294901760, %v1267_v10 }
 0x106   : > { %1183 = vmatmul.f32.vlgmr.msrb.gmra.mxu3 %v1058_v45 }
 0x107   : > { %v1269_v12 = vsub.f32 %v1267_v10, %v1268_v11  ;;  %1343 = vmatpush.msrb.mxu0 %v1268_v11 }
 0x109   : > { %v1270_v13 = vand.u32 4294901760, %v1269_v12 }
 0x10b   : > { %1271 = vmatpush.msra.mxu1 %v1270_v13 }
 0x10d   : > { %1365 = vmatpush.msrb.mxu1 %v1240_v9 }
 0x173   : > { %v1138_v19 = vpop.f32.mrf.mxu1 }
 0x175   : > { %v1114_v17 = vpop.f32.mrf.mxu0 }
 0x179   : > { %v1064_v14 = vpop.f32.mrf.mxu2 }
 0x181   : > { %v1090_v15 = vpop.f32.mrf.mxu3  ;;  %v1162_v21 = vpop.f32.mrf.mxu2 }
 0x182   : > { %v1091_v16 = vadd.f32 %v1090_v15, %v1064_v14 }
 0x184   : > { %v1115_v18 = vadd.f32 %v1114_v17, %v1091_v16 }
 0x186   : > { %v1139_v20 = vadd.f32 %v1138_v19, %v1115_v18 }
 0x188   : > { %v1163_v22 = vadd.f32 %v1162_v21, %v1139_v20 }
 0x189   : > { %v1184_v23 = vpop.f32.mrf.mxu3 }
 0x18a   : > { %v1185_v24 = vadd.f32 %v1184_v23, %v1163_v22 }
 0x18c   : > { %v1188_v25 = vsel %vm1187_vm1, %v1185_v24, -inf }
 0x18d   : > { %v1189_v26 = vrot.slane %v1188_v25, 4 }
 0x18f   : > { %v1190_v27 = vmax.f32 %v1188_v25, %v1189_v26 }
 0x191   : > { %v1191_v28 = vrot.slane %v1190_v27, 2 }
 0x193   : > { %v1192_v29 = vmax.f32 %v1190_v27, %v1191_v28 }
 0x195   : > { %v1193_v30 = vrot.slane %v1192_v29, 1 }
 0x197   : > { %v1194_v31 = vmax.f32 %v1192_v29, %v1193_v30 }
 0x199   : > { %v1195_v32 = vsub.f32 %v1185_v24, %v1194_v31 }
 0x19b   : > { %v1196_v33 = vmul.f32 1.442695, %v1195_v32 }
 0x19d   : > { %1738 = vpow2.f32 %v1196_v33 }
 0x1a3   : > { %v1739_v34 = vpop.eup %1738 }
 0x1a4   : > { %v1198_v35 = vsel %vm1187_vm1, %v1739_v34, 0.0 }
 0x1a5   : > { %v1199_v36 = vrot.slane %v1198_v35, 4 }
 0x1a7   : > { %v1200_v37 = vadd.f32 %v1199_v36, %v1198_v35 }
 0x1a9   : > { %v1201_v38 = vrot.slane %v1200_v37, 2 }
 0x1ab   : > { %v1202_v39 = vadd.f32 %v1201_v38, %v1200_v37 }
 0x1ad   : > { %v1203_v40 = vrot.slane %v1202_v39, 1 }
 0x1af   : > { %v1204_v41 = vadd.f32 %v1203_v40, %v1202_v39 }
 0x1b1   : > { %1740 = vrcp.f32 %v1204_v41  ;;  %v1216_v45 = vand.u32 2147483648, %v1204_v41  ;;  %v1214_v47 = vand.u32 2147483647, %v1204_v41  ;;  %vm1210_vm3 = vweird.f32 %v1204_v41 }
 0x1b3   : > { %v1217_v49 = vor.u32 1.1754944e-38, %v1216_v45  ;;  %vm1215_vm5 = vcmp.eq.f32.partialorder %v1214_v47, 8.507059e+37 }
 0x1b7   : > { %v1741_v42 = vpop.eup %1740 }
 0x1b8   : > { %v1206_v43 = vmul.f32 %v1741_v42, %v1204_v41  ;;  %vm1211_vm2 = vweird.f32 %v1741_v42 }
 0x1b9   : > { %vm1212_vm4 = vmor %vm1210_vm3, %vm1211_vm2 }
 0x1ba   : > { %v1207_v44 = vsub.f32 1.0, %v1206_v43 }
 0x1bc   : > { %v1208_v46 = vmul.f32 %v1741_v42, %v1207_v44 }
 0x1be   : > { %v1209_v48 = vadd.f32 %v1741_v42, %v1208_v46 }
 0x1c0   : > { %v1213_v50 = vsel %vm1212_vm4, %v1741_v42, %v1209_v48 }
 0x1c1   : > { %v1218_v51 = vsel %vm1215_vm5, %v1217_v49, %v1213_v50 }
 0x1c2   : > { %v1219_v52 = vmul.f32 %v1739_v34, %v1218_v51 }
 0x1c4   : > { %v1223_v53 = vsel %vm1187_vm1, %v1219_v52, 0  ;;  %1220 = vst.msk [vmem:[%s451_s30] sm:$0xff] %vm1187_vm1, %v1219_v52 }
 0x1c5   : > { %v1242_v54 = vand.u32 4294901760, %v1223_v53 }
 0x1c7   : > { %1273 = vmatmul.f32.vlgmr.msra.gmra.mxu1 %v1242_v54  ;;  %v1243_v55 = vsub.f32 %v1223_v53, %v1242_v54 }
 0x1c9   : > { %1297 = vmatmul.f32.vlgmr.msra.gmra.mxu2 %v1243_v55  ;;  %v1244_v56 = vand.u32 4294901760, %v1243_v55 }
 0x1cb   : > { %1321 = vmatmul.f32.vlgmr.msra.gmra.mxu3 %v1244_v56  ;;  %v1245_v57 = vsub.f32 %v1243_v55, %v1244_v56 }
 0x1cd   : > { %v1246_v58 = vand.u32 4294901760, %v1245_v57 }
 0x1cf   : > { %1247 = vmatmul.f32.vlgmr.msra.gmra.mxu0 %v1246_v58  ;;  %1367 = vmatmul.f32.vlgmr.msrb.gmra.mxu1 %v1242_v54 }
 0x1d7   : > { %1345 = vmatmul.f32.vlgmr.msrb.gmra.mxu0 %v1242_v54 }
 0x1d8   : > { %1949 = shalt.err (!%p1946_p13)
}
 0x1d9   : > { %1647 = dma.vmem_to_hbm [thread:$0]  (%p2175_p4), %s1412_s28, 128, %s1414_s8, %s1384_s10  }
 0x1da   : > { %s2465_s13 = sld [smem:[#allocation34_spill]]  ;;  %s444_s5 = scalar_lea.vmem [#allocation15], %s2251_s4 }
 0x1db   : > { %s1396_s6 = sshll.u32 %s444_s5, 4  ;;  %s1379_s11 = scalar_lea.sflag [#allocation6], %s2248_s9  ;;  %s1397_s6 = int_to_ptr.vmem [resolvable:$true] %s1396_s6 }
 0x1e0   : > { %s1394_s12 = scalar_lea.hbm %s2465_s13, %s1624_s21  ;;  %s1970_s4 = scalar_lea.hbm %s2465_s13, 16 }
 0x1e1   : > { %s1398_s24 = sshll.u32 %s1394_s12, 4  ;;  %s1399_s24 = int_to_ptr.hbm [resolvable:$true] %s1398_s24 }
 0x1e2   : > { %s1964_s30 = sshra.s32 %s1399_s24, 4  ;;  %s1965_s30 = int_to_ptr.hbm [resolvable:$true] %s1964_s30 }
 0x1e3   : > { %s1966_s17 = scalar_lea.hbm %s1965_s30, 8  ;;  %p1971_p8 = scmp.lt.s32.totalorder %s1965_s30, %s2465_s13 }
 0x1e4   : > { %p1967_p0 = scmp.ne.s32.totalorder %s1965_s30, %s1966_s17  ;;  %p1972_p1 = scmp.lt.s32.totalorder %s1970_s4, %s1966_s17 }
 0x1e6   : > { %p1968_p2 = pnand %p1967_p0, %p2175_p4  ;;  %p1973_p3 = por %p1972_p1, %p1971_p8 }
 0x1e8   : > { %p1969_p7 = pneg %p1968_p2 }
 0x1ea   : > { %p1974_p5 = pnand %p1973_p3, %p1969_p7 }
 0x244   : > { %v1274_v59 = vpop.f32.mrf.mxu1 }
 0x24c   : > { %v1248_v60 = vpop.f32.mrf.mxu0  ;;  %v1298_v62 = vpop.f32.mrf.mxu2 }
 0x24d   : > { %v1275_v61 = vadd.f32 %v1274_v59, %v1248_v60  ;;  %v1368_v4 = vpop.f32.mrf.mxu1 }
 0x24e   : > { %v1322_v0 = vpop.f32.mrf.mxu3 }
 0x24f   : > { %v1299_v63 = vadd.f32 %v1298_v62, %v1275_v61 }
 0x251   : > { %v1323_v1 = vadd.f32 %v1322_v0, %v1299_v63 }
 0x254   : > { %v1346_v2 = vpop.f32.mrf.mxu0 }
 0x255   : > { %v1347_v3 = vadd.f32 %v1346_v2, %v1323_v1 }
 0x257   : > { %v1369_v5 = vadd.f32 %v1368_v4, %v1347_v3 }
 0x259   : > { %1377 = vst [vmem:[%s444_s5] sm:$0xff] %v1369_v5 }
 0x25a   : > { %1977 = shalt.err (!%p1974_p5)
}
 0x25b   : > { %1646 = dma.vmem_to_hbm [thread:$0]  (%p2175_p4), %s1397_s6, 128, %s1399_s24, %s1379_s11  }
 0x25c PF: > { %s2466_s9 = sld [smem:[#allocation24_spill]]  ;;  %p1671_p10 = pnand %p1606_p6, %p2183_p9 }
 0x25d   : > { %s2468_s10 = sld [smem:[#allocation26_spill]] }
 0x25e   : > { %p1672_p11 = pneg %p1671_p10 }
 0x262   : > { %s1425_s15 = sand.u32 1, %s2466_s9  }
 0x263   : > { %s1426_s18 = scalar_lea.sflag [#allocation6], %s1425_s15 }
 0x264   : > { %2019 = dma.done.wait (%p1672_p11), %s1426_s18, 128  }
 0x265   : > { %2021 = vsyncadd (%p1672_p11), %s1426_s18, 4294967168  ;;  %s1436_s22 = scalar_lea.sflag [#allocation17], %s1425_s15 }
 0x266   : > { %2023 = dma.done.wait (%p1672_p11), %s1436_s22, 128  }
 0x267   : > { %2025 = vsyncadd (%p1672_p11), %s1436_s22, 4294967168  ;;  %s32_s29 = sadd.s32 1, %s2468_s10   ;;  %s2469_s23 = sld [smem:[#allocation28_spill]] }
 0x268   : > { %p29_p12 = scmp.ge.s32.totalorder %s32_s29, 4   ;;  %s2470_s27 = sld [smem:[#allocation25_spill]] }
 0x269   : > { %s2471_s28 = sld [smem:[#allocation27_spill]]  ;;  %s2472_s24 = smov %s2032_s25 }
 0x26a   : > { %s2473_s25 = smov %s2036_s26  ;;  %31 = sbr.rel (!%p29_p12) target bundleno = 18 (0x12), region = 150 }
 0x26d   : > { %s2474_s26 = smov %s2469_s23 }
 0x26f   :  { %1442 = vsyncpa [#allocation5], 1 }
 0x270   :  { %1444 = vsyncpa [#allocation5 + $0x1], 1 }
 0x271   :  { %1445 = vsyncpa [#allocation8], 1 }
 0x272   :  { %1447 = vsyncpa [#allocation8 + $0x1], 1 }
 0x273   :  { %1448 = vsyncpa [#allocation11], 1 }
 0x274   :  { %1449 = vsyncpa [#allocation14], 1 }
 0x275   :  { %1450 = vsyncpa [#allocation6], 1 }
 0x276   :  { %1452 = vsyncpa [#allocation6 + $0x1], 1 }
 0x277   :  { %1453 = vsyncpa [#allocation17], 1 }
 0x278   :  { %1455 = vsyncpa [#allocation17 + $0x1], 1 }

</bundles_post_ra>
